<compile_context>
chip_gen: v7x
topology: tpu7x:2x2x1
jax: 0.10.0
libtpu: 0.0.40
codegen_flags: <defaults>
</compile_context>

<pallas_src>
from functools import partial

import jax
import jax.numpy as jnp
from jax.experimental import pallas as pl
from jax.experimental.pallas import tpu as pltpu


# ---------------------------------------------------------------------------
# Kernel: ReLU (VPU) -> matmul (MXU, f32 accumulate) -> bias add (VPU)
# Works unchanged for packed or unpacked layouts.
# ---------------------------------------------------------------------------
def _reconstruct_kernel(x_ref, wt_ref, b_ref, o_ref):
    x = jnp.maximum(x_ref[...], 0.0)
    acc = jnp.dot(x, wt_ref[...], preferred_element_type=jnp.float32)
    o_ref[...] = (acc + b_ref[...]).astype(o_ref.dtype)


# ---------------------------------------------------------------------------
# One-time parameter preparation (off the hot path).
# ---------------------------------------------------------------------------
def _round_up(v, m):
    return ((v + m - 1) // m) * m


def _pack_factor(out_dim, lane=128):
    """Rows packed per lane-row so output stores are lane-dense (128-wide)."""
    if out_dim % lane == 0:
        return 1                    # already lane-dense
    if lane % out_dim == 0:
        return lane // out_dim      # e.g. out_dim=16 -> pack 8 rows -> 128 lanes
    return 1                        # fallback: unpadded (masked) stores, no slice


def prepare_params(weight, bias, lane=128):
    """weight: (out_dim, in_dim); bias: (out_dim,) [PyTorch Linear layout].

    Returns (wt_packed, b_packed, pack):
      wt_packed: (pack*in_dim, pack*out_dim) block-diagonal copy of W.T
      b_packed:  (1, pack*out_dim) tiled bias
    """
    out_dim, in_dim = weight.shape
    pack = _pack_factor(out_dim, lane)
    wt = weight.T                                     # (in_dim, out_dim)
    if pack == 1:
        wt_packed = wt
        b_packed = bias.reshape(1, out_dim)
    else:
        eye = jnp.eye(pack, dtype=weight.dtype)
        wt_packed = jnp.kron(eye, wt)                 # (pack*K, pack*N) block-diag
        b_packed = jnp.tile(bias, pack).reshape(1, pack * out_dim)
    return wt_packed, b_packed, pack


def _choose_block_rows(rows, max_rows=1024):
    # 1024 packed rows (K=256, N=128, f32) = ~1.5 MiB/buffer, ~3 MiB with
    # double buffering -> inside v5e 16 MiB and v6e/v7x 32 MiB scoped VMEM.
    # Also keep >=2 grid tiles when possible so both v7x TensorCores get work.
    if rows <= 8:
        return rows                                   # full-extent block
    half = _round_up(pl.cdiv(rows, 2), 8)
    return min(max_rows, half)


# ---------------------------------------------------------------------------
# Forward
# ---------------------------------------------------------------------------
@partial(jax.jit, static_argnames=("pack", "block_rows"))
def _forward_impl(x, wt_packed, b_packed, *, pack, block_rows):
    batch, in_dim = x.shape
    kp, np_ = wt_packed.shape
    out_dim = np_ // pack
    assert kp == pack * in_dim

    pad = (-batch) % pack
    if pad:                                           # < pack rows, negligible
        x = jnp.pad(x, ((0, pad), (0, 0)))
    rows = (batch + pad) // pack
    xp = x.reshape(rows, pack * in_dim)               # free row-major reshape

    grid_rows = pl.cdiv(rows, block_rows)             # ragged tail is masked

    itemsize = jnp.dtype(x.dtype).itemsize
    cost = pl.CostEstimate(
        flops=2 * batch * in_dim * out_dim,
        transcendentals=0,
        bytes_accessed=(xp.size + wt_packed.size + b_packed.size + rows * np_)
        * itemsize,
    )

    out_packed = pl.pallas_call(
        _reconstruct_kernel,
        out_shape=jax.ShapeDtypeStruct((rows, np_), x.dtype),
        grid=(grid_rows,),
        in_specs=[
            pl.BlockSpec((block_rows, kp), lambda i: (i, 0)),   # packed x tile
            pl.BlockSpec((kp, np_), lambda i: (0, 0)),          # weight (pinned)
            pl.BlockSpec((1, np_), lambda i: (0, 0)),           # bias   (pinned)
        ],
        out_specs=pl.BlockSpec((block_rows, np_), lambda i: (i, 0)),
        compiler_params=pltpu.CompilerParams(
            dimension_semantics=("parallel",),        # megacore sharding on v7x
        ),
        cost_estimate=cost,
    )(xp, wt_packed, b_packed)

    out = out_packed.reshape(rows * pack, out_dim)    # free row-major reshape
    if pad:
        out = out[:batch]
    return out


def reconstruct_net_forward(x, wt_packed, b_packed, pack, block_rows=None):
    """x: (B, in_dim) f32; (wt_packed, b_packed, pack) from prepare_params()."""
    rows = pl.cdiv(x.shape[0], pack)
    if block_rows is None:
        block_rows = _choose_block_rows(rows)
    return _forward_impl(x, wt_packed, b_packed, pack=pack, block_rows=block_rows)


def reference_forward(x, weight, bias):
    return jnp.maximum(x, 0.0) @ weight.T + bias


# ---------------------------------------------------------------------------
if __name__ == "__main__":
    input_dim, output_dim = 32, 16

    key = jax.random.PRNGKey(0)
    kx, kw, kb, kx2, kx3 = jax.random.split(key, 5)

    # Deterministic PyTorch-like Linear init: U(-1/sqrt(fan_in), 1/sqrt(fan_in))
    bound = 1.0 / (input_dim ** 0.5)
    weight = jax.random.uniform(kw, (output_dim, input_dim),
                                minval=-bound, maxval=bound, dtype=jnp.float32)
    bias = jax.random.uniform(kb, (output_dim,),
                              minval=-bound, maxval=bound, dtype=jnp.float32)

    # One-time parameter prep (transpose + block-diagonal packing).
    wt_packed, b_packed, pack = prepare_params(weight, bias)

    # Case 1: batch large enough to exercise row tiling (pack=8 -> 32 packed
    # rows -> 2 grid tiles).
    batch = 256
    x = jax.random.normal(kx, (batch, input_dim), dtype=jnp.float32)
    out = jax.block_until_ready(reconstruct_net_forward(x, wt_packed, b_packed, pack))
    ref = reference_forward(x, weight, bias)
    assert out.shape == (batch, output_dim)
    assert jnp.allclose(out, ref, atol=1e-5, rtol=1e-5), "mismatch (B=256)"

    # Case 2: tiny batch (single packed row, full-extent block).
    batch_small = 8
    x_small = jax.random.normal(kx2, (batch_small, input_dim), dtype=jnp.float32)
    out_small = jax.block_until_ready(
        reconstruct_net_forward(x_small, wt_packed, b_packed, pack))
    ref_small = reference_forward(x_small, weight, bias)
    assert out_small.shape == (batch_small, output_dim)
    assert jnp.allclose(out_small, ref_small, atol=1e-5, rtol=1e-5), "mismatch (B=8)"

    # Case 3: batch not divisible by pack (exercises the tiny zero-row pad).
    batch_odd = 37
    x_odd = jax.random.normal(kx3, (batch_odd, input_dim), dtype=jnp.float32)
    out_odd = jax.block_until_ready(
        reconstruct_net_forward(x_odd, wt_packed, b_packed, pack))
    ref_odd = reference_forward(x_odd, weight, bias)
    assert out_odd.shape == (batch_odd, output_dim)
    assert jnp.allclose(out_odd, ref_odd, atol=1e-5, rtol=1e-5), "mismatch (B=37)"

    print("KERNEL_OK")
</pallas_src>

<mosaic_0001>
module attributes {stable_mosaic.version = 11 : i64} {
  func.func @_reconstruct_kernel(%arg0: i32, %arg1: memref<16x256xf32, #tpu.memory_space<vmem>>, %arg2: memref<256x128xf32, #tpu.memory_space<vmem>>, %arg3: memref<1x128xf32, #tpu.memory_space<vmem>>, %arg4: memref<16x128xf32, #tpu.memory_space<vmem>>) attributes {dimension_semantics = [#tpu.dimension_semantics<parallel>], iteration_bounds = array<i64: 2>, scalar_prefetch = 0 : i64, scratch_operands = 0 : i64, tpu.core_type = #tpu.core_type<tc>, window_params = [{transform_indices = @transform_0, window_bounds = array<i64: 16, 256>}, {pipeline_mode = #tpu.pipeline_mode<synchronous>, transform_indices = @transform_1, window_bounds = array<i64: 256, 128>}, {pipeline_mode = #tpu.pipeline_mode<synchronous>, transform_indices = @transform_2, window_bounds = array<i64: 1, 128>}, {transform_indices = @transform_3, window_bounds = array<i64: 16, 128>}]} {
    %c0 = arith.constant 0 : index
    %c0_0 = arith.constant 0 : index
    %0 = vector.load %arg1[%c0, %c0_0] : memref<16x256xf32, #tpu.memory_space<vmem>>, vector<16x256xf32>
    %cst = arith.constant 0.000000e+00 : f32
    %1 = vector.broadcast %cst : f32 to vector<16x256xf32>
    %2 = arith.maximumf %0, %1 : vector<16x256xf32>
    %c0_1 = arith.constant 0 : index
    %c0_2 = arith.constant 0 : index
    %3 = vector.load %arg2[%c0_1, %c0_2] : memref<256x128xf32, #tpu.memory_space<vmem>>, vector<256x128xf32>
    %cst_3 = arith.constant dense<0.000000e+00> : vector<16x128xf32>
    %4 = tpu.matmul %2, %3, %cst_3 {dimension_numbers = #tpu.dot_dimension_numbers<[1], [0], [0], [1], [0, 0, 1, 1], [], []>} : vector<16x256xf32>, vector<256x128xf32>, vector<16x128xf32> -> vector<16x128xf32>
    %c0_4 = arith.constant 0 : index
    %c0_5 = arith.constant 0 : index
    %5 = vector.load %arg3[%c0_4, %c0_5] : memref<1x128xf32, #tpu.memory_space<vmem>>, vector<1x128xf32>
    %6 = vector.broadcast %5 : vector<1x128xf32> to vector<16x128xf32>
    %7 = arith.addf %4, %6 : vector<16x128xf32>
    %c0_6 = arith.constant 0 : index
    %c0_7 = arith.constant 0 : index
    %8 = vector.load %arg4[%c0_6, %c0_7] : memref<16x128xf32, #tpu.memory_space<vmem>>, vector<16x128xf32>
    tpu.vector_store %arg4[%c0_6, %c0_7], %7 {strides = array<i32>} : memref<16x128xf32, #tpu.memory_space<vmem>>, vector<16x128xf32>,
    return
  }
  func.func @transform_0(%arg0: i32) -> (i32, i32) {
    %c0_i32 = arith.constant 0 : i32
    %c0_i32_0 = arith.constant 0 : i32
    return %arg0, %c0_i32 : i32, i32
  }
  func.func @transform_1(%arg0: i32) -> (i32, i32) {
    %c0_i32 = arith.constant 0 : i32
    %c0_i32_0 = arith.constant 0 : i32
    %c0_i32_1 = arith.constant 0 : i32
    return %c0_i32, %c0_i32_0 : i32, i32
  }
  func.func @transform_2(%arg0: i32) -> (i32, i32) {
    %c0_i32 = arith.constant 0 : i32
    %c0_i32_0 = arith.constant 0 : i32
    %c0_i32_1 = arith.constant 0 : i32
    return %c0_i32, %c0_i32_0 : i32, i32
  }
  func.func @transform_3(%arg0: i32) -> (i32, i32) {
    %c0_i32 = arith.constant 0 : i32
    %c0_i32_0 = arith.constant 0 : i32
    return %arg0, %c0_i32 : i32, i32
  }
}

</mosaic_0001>

<bundles_post_ra>
// kernel: _forward_impl.1
= control target key start
LH: loop header
LB: loop body
LE: loop exit
PB: predicated region body
PF: predicated region fallthrough
CT: control target
= control target key end

     0   :  { %s493_s12 = smov 0   ;;  %s619_s0 = inlined_call_operand.vmem [shape: f32[32,256], index: 0, kind: input, shape index: {}]   ;;  %s620_s1 = inlined_call_operand.vmem [shape: f32[256,128], index: 1, kind: input, shape index: {}]   ;;  %s621_s2 = inlined_call_operand.vmem [shape: f32[1,128], index: 2, kind: input, shape index: {}]   ;;  %s622_s3 = inlined_call_operand.vmem [shape: f32[32,128], index: 3, kind: output, shape index: {}]  }
   0x1 LB: > { %s357_s13 = sadd.s32 4294967295, %s471_s12   ;;  %p361_p0 = scmp.ge.s32.totalorder %s471_s12, 1  ;;  %s471_s12 = sphi %s493_s12, %s13_s12  }
   0x2   : > { %p139_p1 = scmp.lt.s32.totalorder %s471_s12, 3 }
   0x4   : > { %p140_p2 = pnand %p361_p0, %p139_p1 }
   0x5   : > { %v201_v0 = vld [vmem:[%s620_s1 + $0x80] sm:$0xff] (!%p140_p2)  ;;  %v202_v1 = vld [vmem:[%s620_s1 + $0x88] sm:$0xff] (!%p140_p2)  ;;  %s362_s20 = sshll.u32 (!%p140_p2), %s357_s13, 1  ;;  %v203_v5 = vld [vmem:[%s620_s1 + $0x90] sm:$0xff] (!%p140_p2) }
   0x6   : > { %143 = sbr.rel (%p140_p2) target bundleno = 258 (0x102), region = 32  ;;  %v185_v2 = vld [vmem:[%s620_s1] sm:$0xff] (!%p140_p2)  ;;  %v409_v3 = vpack.c.bf16 (!%p140_p2), %v202_v1, %v201_v0  ;;  %v186_v4 = vld [vmem:[%s620_s1 + $0x8] sm:$0xff] (!%p140_p2)  ;;  %v204_v6 = vld [vmem:[%s620_s1 + $0x98] sm:$0xff] (!%p140_p2)  ;;  %p165_p3 = scmp.lt.s32.totalorder (!%p140_p2), %s362_s20, 3 }
   0x7   : > { %v411_v7 = vpack.c.bf16 (!%p140_p2), %v186_v4, %v185_v2  ;;  %v413_v8 = vpack.c.bf16 (!%p140_p2), %v204_v6, %v203_v5  ;;  %v187_v9 = vld [vmem:[%s620_s1 + $0x10] sm:$0xff] (!%p140_p2)  ;;  %v188_v10 = vld [vmem:[%s620_s1 + $0x18] sm:$0xff] (!%p140_p2)  ;;  %v205_v11 = vld [vmem:[%s620_s1 + $0xa0] sm:$0xff] (!%p140_p2) }
   0x8   : > { %410 = vmatprep.subr.bf16.mxu0 (!%p140_p2), %v409_v3  ;;  %441 = vmatprep.subr.bf16.mxu1 (!%p140_p2), %v409_v3  ;;  %v206_v12 = vld [vmem:[%s620_s1 + $0xa8] sm:$0xff] (!%p140_p2)  ;;  %v415_v13 = vpack.c.bf16 (!%p140_p2), %v188_v10, %v187_v9  ;;  %v189_v15 = vld [vmem:[%s620_s1 + $0x20] sm:$0xff] (!%p140_p2)  ;;  %v207_v17 = vld [vmem:[%s620_s1 + $0xb0] sm:$0xff] (!%p140_p2) }
   0x9   : > { %412 = vmatpush3.bf16.msra.mxu0 (!%p140_p2), %v411_v7  ;;  %449 = vmatpush3.bf16.msra.mxu1 (!%p140_p2), %v411_v7  ;;  %v417_v14 = vpack.c.bf16 (!%p140_p2), %v206_v12, %v205_v11  ;;  %v190_v16 = vld [vmem:[%s620_s1 + $0x28] sm:$0xff] (!%p140_p2)  ;;  %v208_v18 = vld [vmem:[%s620_s1 + $0xb8] sm:$0xff] (!%p140_p2)  ;;  %v191_v21 = vld [vmem:[%s620_s1 + $0x30] sm:$0xff] (!%p140_p2) }
   0xa   : > { %414 = vmatprep.subr.bf16.mxu0 (!%p140_p2), %v413_v8  ;;  %442 = vmatprep.subr.bf16.mxu1 (!%p140_p2), %v413_v8  ;;  %v419_v19 = vpack.c.bf16 (!%p140_p2), %v190_v16, %v189_v15  ;;  %v421_v20 = vpack.c.bf16 (!%p140_p2), %v208_v18, %v207_v17  ;;  %v192_v22 = vld [vmem:[%s620_s1 + $0x38] sm:$0xff] (!%p140_p2)  ;;  %v209_v23 = vld [vmem:[%s620_s1 + $0xc0] sm:$0xff] (!%p140_p2)  ;;  %v210_v24 = vld [vmem:[%s620_s1 + $0xc8] sm:$0xff] (!%p140_p2) }
   0xb   : > { %v423_v28 = vpack.c.bf16 (!%p140_p2), %v192_v22, %v191_v21  ;;  %v425_v30 = vpack.c.bf16 (!%p140_p2), %v210_v24, %v209_v23  ;;  %v193_v31 = vld [vmem:[%s620_s1 + $0x40] sm:$0xff] (!%p140_p2)  ;;  %v194_v32 = vld [vmem:[%s620_s1 + $0x48] sm:$0xff] (!%p140_p2)  ;;  %v211_v33 = vld [vmem:[%s620_s1 + $0xd0] sm:$0xff] (!%p140_p2) }
   0xc   : > { %v212_v34 = vld [vmem:[%s620_s1 + $0xd8] sm:$0xff] (!%p140_p2)  ;;  %v427_v35 = vpack.c.bf16 (!%p140_p2), %v194_v32, %v193_v31  ;;  %v195_v37 = vld [vmem:[%s620_s1 + $0x50] sm:$0xff] (!%p140_p2)  ;;  %v213_v39 = vld [vmem:[%s620_s1 + $0xe0] sm:$0xff] (!%p140_p2) }
   0xd   : > { %s624_s20 = smov (!%p165_p3, %s362_s20), 3  ;;  %416 = vmatpush3.bf16.msra.mxu0 %v415_v13  ;;  %450 = vmatpush3.bf16.msra.mxu1 %v415_v13  ;;  %v429_v36 = vpack.c.bf16 %v212_v34, %v211_v33  ;;  %v196_v38 = vld [vmem:[%s620_s1 + $0x58] sm:$0xff]  ;;  %v214_v40 = vld [vmem:[%s620_s1 + $0xe8] sm:$0xff]  ;;  %v197_v43 = vld [vmem:[%s620_s1 + $0x60] sm:$0xff] }
   0xe   : > { %s370_s13 = sshll.u32 %s624_s20, 4  ;;  %418 = vmatprep.subr.bf16.mxu0 %v417_v14  ;;  %443 = vmatprep.subr.bf16.mxu1 %v417_v14  ;;  %v431_v41 = vpack.c.bf16 %v196_v38, %v195_v37  ;;  %v433_v42 = vpack.c.bf16 %v214_v40, %v213_v39  ;;  %v198_v44 = vld [vmem:[%s620_s1 + $0x68] sm:$0xff]  ;;  %v215_v45 = vld [vmem:[%s620_s1 + $0xf0] sm:$0xff]  ;;  %v216_v46 = vld [vmem:[%s620_s1 + $0xf8] sm:$0xff]  ;;  %s366_s7 = sshll.u32 %s624_s20, 3 }
   0xf   : > { %s549_s21 = scalar_lea.vmem %s619_s0, %s370_s13  ;;  %v435_v47 = vpack.c.bf16 %v198_v44, %v197_v43  ;;  %v437_v48 = vpack.c.bf16 %v216_v46, %v215_v45  ;;  %v199_v49 = vld [vmem:[%s620_s1 + $0x70] sm:$0xff]  ;;  %v200_v50 = vld [vmem:[%s620_s1 + $0x78] sm:$0xff]  ;;  %v367_v58 = vld [vmem:[%s621_s2] ss:$0 sm:$0xff]  ;;  %s175_s11 = scalar_lea.vmem %s622_s3, %s366_s7 }
  0x10   : > { %v178_v25 = vld [vmem:[%s549_s21 + $0x8] sm:$0xff]  ;;  %v180_v27 = vld [vmem:[%s549_s21 + $0x18] sm:$0xff]  ;;  %v439_v51 = vpack.c.bf16 %v200_v50, %v199_v49  ;;  %v177_v52 = vld [vmem:[%s549_s21] sm:$0xff] }
  0x11   : > { %v182_v26 = vmax.f32 %v178_v25, 0.0  ;;  %420 = vmatpush3.bf16.msra.mxu0 %v419_v19  ;;  %451 = vmatpush3.bf16.msra.mxu1 %v419_v19  ;;  %v184_v29 = vmax.f32 %v180_v27, 0.0  ;;  %v179_v53 = vld [vmem:[%s549_s21 + $0x10] sm:$0xff]  ;;  %v181_v54 = vmax.f32 %v177_v52, 0.0 }
  0x12   : > { %422 = vmatprep.subr.bf16.mxu0 %v421_v20  ;;  %444 = vmatprep.subr.bf16.mxu1 %v421_v20  ;;  %v183_v55 = vmax.f32 %v179_v53, 0.0 }
  0x13   : > { %288 = vmatprep.mubr.f32.mxu0 %v182_v26  ;;  %293 = vmatprep.mubr.f32.mxu1 %v184_v29 }
  0x15   : > { %424 = vmatpush3.bf16.msra.mxu0 %v423_v28  ;;  %452 = vmatpush3.bf16.msra.mxu1 %v423_v28 }
  0x16   : > { %426 = vmatprep.subr.bf16.mxu0 %v425_v30  ;;  %445 = vmatprep.subr.bf16.mxu1 %v425_v30 }
  0x19   : > { %428 = vmatpush3.bf16.msra.mxu0 %v427_v35  ;;  %453 = vmatpush3.bf16.msra.mxu1 %v427_v35 }
  0x1a   : > { %430 = vmatprep.subr.bf16.mxu0 %v429_v36  ;;  %446 = vmatprep.subr.bf16.mxu1 %v429_v36 }
  0x1d   : > { %432 = vmatpush3.bf16.msra.mxu0 %v431_v41  ;;  %454 = vmatpush3.bf16.msra.mxu1 %v431_v41 }
  0x1e   : > { %434 = vmatprep.subr.bf16.mxu0 %v433_v42  ;;  %447 = vmatprep.subr.bf16.mxu1 %v433_v42 }
  0x21   : > { %436 = vmatpush3.bf16.msra.mxu0 %v435_v47  ;;  %455 = vmatpush3.bf16.msra.mxu1 %v435_v47 }
  0x22   : > { %438 = vmatprep.subr.bf16.mxu0 %v437_v48  ;;  %448 = vmatprep.subr.bf16.mxu1 %v437_v48 }
  0x25   : > { %440 = vmatpush3.bf16.msra.mxu0 %v439_v51  ;;  %456 = vmatpush3.bf16.msra.mxu1 %v439_v51 }
  0x28   : > { %289 = vmatmul.mubr.f32.vlgmr.msra.gmra.mrb[0].mxu0 %v181_v54  ;;  %294 = vmatmul.mubr.f32.vlgmr.msra.gmra.mrb[0].mxu1 %v183_v55 }
  0xfb   : > { %v403_v56 = vpop.f32.mrb[0].mxu0  ;;  %v406_v57 = vpop.f32.mrb[0].mxu1 }
  0xfc   : > { %v404_v59 = vpop.f32.mrb[1].mxu0  ;;  %v407_v60 = vpop.f32.mrb[1].mxu1 }
  0xfd   : > { %v405_v61 = vadd.f32 %v404_v59, %v403_v56  ;;  %v408_v62 = vadd.f32 %v407_v60, %v406_v57 }
  0xff   : > { %v291_v63 = vadd.f32 %v405_v61, %v367_v58  ;;  %v296_v0 = vadd.f32 %v408_v62, %v367_v58 }
 0x101   : > { %299 = vst [vmem:[%s175_s11] sm:$0xff] %v291_v63  ;;  %300 = vst [vmem:[%s175_s11 + $0x8] sm:$0xff] %v296_v0 }
 0x102 PF: > { %s13_s12 = sadd.s32 1, %s471_s12  }
 0x103   : > { %p10_p4 = scmp.ge.s32.totalorder %s13_s12, 4  }
 0x105   :  { %12 = sbr.rel (!%p10_p4) target bundleno = 1 (0x1), region = 62 }

</bundles_post_ra>
